<compile_context>
chip_gen: v7x
topology: tpu7x:2x2x1
jax: 0.10.0
libtpu: 0.0.40
codegen_flags: <defaults>
</compile_context>

<pallas_src>
import jax
import jax.numpy as jnp
from jax.experimental import pallas as pl
from jax.experimental.pallas import tpu as pltpu

EMB = 64
VAR_NFEATS = 6
LN_EPS = 1e-5
MAX_TILE_N = 512  # row tile cap (sublane-aligned, comfortably within VMEM)


def _round_up(x, m):
    return ((x + m - 1) // m) * m


def _pick_tile(n):
    """Row-tile size: big (<=512) but leaving >=2 grid steps when possible (v7x has 2 TCs)."""
    if n <= 8:
        return max(int(n), 1)          # single full-array block
    return int(min(MAX_TILE_N, _round_up((n + 1) // 2, 8)))


def _mlp3_kernel(feats_ref, w1_ref, b1_ref, w2_ref, b2_ref,
                 w3_ref, b3_ref, w4_ref, out_ref):
    # ---- LayerNorm over the 6 features (population variance, eps=1e-5) -----
    # Affine (gamma/beta) is folded into W1/b1 by the wrapper.
    x = feats_ref[...].astype(jnp.float32)                     # (T, 6)
    mean = jnp.mean(x, axis=-1, keepdims=True)
    cent = x - mean
    var = jnp.mean(cent * cent, axis=-1, keepdims=True)
    xn = cent * jax.lax.rsqrt(var + LN_EPS)                    # (T, 6)

    # ---- var_embedding: Linear(6,64) -> ReLU -> Linear(64,64) -> ReLU ------
    # bf16 MXU inputs, f32 accumulation; biases added in f32.
    h = jnp.dot(xn.astype(jnp.bfloat16), w1_ref[...],
                preferred_element_type=jnp.float32) + b1_ref[...]
    h = jnp.maximum(h, 0.0)
    h = jnp.dot(h.astype(jnp.bfloat16), w2_ref[...],
                preferred_element_type=jnp.float32) + b2_ref[...]
    h = jnp.maximum(h, 0.0)

    # ---- output_module: Linear(64,64) -> ReLU -> Linear(64,2, no bias) -----
    h = jnp.dot(h.astype(jnp.bfloat16), w3_ref[...],
                preferred_element_type=jnp.float32) + b3_ref[...]
    h = jnp.maximum(h, 0.0)
    out = jnp.dot(h.astype(jnp.bfloat16), w4_ref[...],
                  preferred_element_type=jnp.float32)          # (T, 2)

    out_ref[...] = out.astype(out_ref.dtype)


@jax.jit
def mlp3_pallas(feats, params):
    """feats: (N, 6) float32 -> (N, 2) float32."""
    feats = feats.astype(jnp.float32)
    n = feats.shape[0]
    tile_n = _pick_tile(n)
    grid = (pl.cdiv(n, tile_n),)

    # ---- parameter prep (runs fused inside jit; weights are tiny) ----------
    gamma = params["gamma"].astype(jnp.float32)
    beta = params["beta"].astype(jnp.float32)
    w1 = params["w1"].astype(jnp.float32)
    # Fold LayerNorm affine into the first Linear: xn*g+b @ W1 + b1
    #   == xn @ (g[:,None]*W1) + (b @ W1 + b1)
    w1f = (gamma[:, None] * w1).astype(jnp.bfloat16)                    # (6, 64)
    b1f = (beta @ w1 + params["b1"]).reshape(1, EMB).astype(jnp.float32)
    w2 = params["w2"].astype(jnp.bfloat16)                              # (64, 64)
    b2 = params["b2"].reshape(1, EMB).astype(jnp.float32)
    w3 = params["w3"].astype(jnp.bfloat16)                              # (64, 64)
    b3 = params["b3"].reshape(1, EMB).astype(jnp.float32)
    w4 = params["w4"].astype(jnp.bfloat16)                              # (64, 2)

    weight_bytes = 2 * (w1f.size + w2.size + w3.size + w4.size) \
        + 4 * (b1f.size + b2.size + b3.size)
    cost = pl.CostEstimate(
        flops=2 * n * (VAR_NFEATS * EMB + EMB * EMB + EMB * EMB + EMB * 2),
        transcendentals=n,  # one rsqrt per row
        bytes_accessed=n * (VAR_NFEATS + 2) * 4 + weight_bytes,
    )

    full = lambda shape: pl.BlockSpec(shape, lambda i: (0, 0))  # constant block
                                                                # index -> DMA'd once

    out = pl.pallas_call(
        _mlp3_kernel,
        out_shape=jax.ShapeDtypeStruct((n, 2), jnp.float32),
        grid_spec=pltpu.PrefetchScalarGridSpec(
            num_scalar_prefetch=0,
            grid=grid,
            in_specs=[
                pl.BlockSpec((tile_n, VAR_NFEATS), lambda i: (i, 0)),  # feats tile
                full((VAR_NFEATS, EMB)),                               # W1 (LN-folded, bf16)
                full((1, EMB)),                                        # b1 (LN-folded, f32)
                full((EMB, EMB)),                                      # W2 (bf16)
                full((1, EMB)),                                        # b2
                full((EMB, EMB)),                                      # W3 (bf16)
                full((1, EMB)),                                        # b3
                full((EMB, 2)),                                        # W4 (bf16, no bias)
            ],
            out_specs=pl.BlockSpec((tile_n, 2), lambda i: (i, 0)),
        ),
        compiler_params=pltpu.CompilerParams(
            dimension_semantics=("parallel",)),
        cost_estimate=cost,
    )(feats, w1f, b1f, w2, b2, w3, b3, w4)

    return out


def mlp3_policy_forward(con_features, var_features, obj_features,
                        cv_edge_indices, cv_edge_features,
                        ov_edge_indices, ov_edge_features,
                        num_graphs, params):
    # Glue (reshape / concat) in plain JAX — matches the PyTorch forward exactly.
    feats = jnp.concatenate(
        (con_features.reshape(-1, 3), obj_features[:, -1].reshape(-1, 3)), axis=-1)
    out = mlp3_pallas(feats, params)
    # .squeeze(-1) in PyTorch is a no-op here (last dim is 2).
    return out


def init_params(key):
    ks = jax.random.split(key, 6)
    scale = 0.1
    return {
        # Non-trivial LN affine so the W1/b1 fold is actually exercised.
        "gamma": 1.0 + 0.1 * jax.random.normal(ks[4], (VAR_NFEATS,), jnp.float32),
        "beta": 0.1 * jax.random.normal(ks[5], (VAR_NFEATS,), jnp.float32),
        # Linear weights stored as (in, out)  (i.e. PyTorch weight.T)
        "w1": scale * jax.random.normal(ks[0], (VAR_NFEATS, EMB), jnp.float32),
        "b1": jnp.zeros((EMB,), jnp.float32),
        "w2": scale * jax.random.normal(ks[1], (EMB, EMB), jnp.float32),
        "b2": jnp.zeros((EMB,), jnp.float32),
        "w3": scale * jax.random.normal(ks[2], (EMB, EMB), jnp.float32),
        "b3": jnp.zeros((EMB,), jnp.float32),
        "w4": scale * jax.random.normal(ks[3], (EMB, 2), jnp.float32),
    }


def _reference(feats, p):
    # Pure-JAX f32 reference (unfused LN affine, f32 matmuls).
    x = feats
    mean = jnp.mean(x, axis=-1, keepdims=True)
    var = jnp.mean((x - mean) ** 2, axis=-1, keepdims=True)
    xn = (x - mean) / jnp.sqrt(var + LN_EPS) * p["gamma"] + p["beta"]
    h = jnp.maximum(xn @ p["w1"] + p["b1"], 0.0)
    h = jnp.maximum(h @ p["w2"] + p["b2"], 0.0)
    h = jnp.maximum(h @ p["w3"] + p["b3"], 0.0)
    return h @ p["w4"]


if __name__ == "__main__":
    key = jax.random.PRNGKey(0)
    k_con, k_var, k_obj, k_cvf, k_ovf, k_params = jax.random.split(key, 6)

    N = 24  # number of rows after reshape(-1, 3); not a multiple of the tile -> ragged block path
    con_features = jax.random.normal(k_con, (N, 3), jnp.float32)        # reshape(-1,3) -> (N,3)
    var_features = jax.random.normal(k_var, (N, 6), jnp.float32)        # unused in forward
    obj_features = jax.random.normal(k_obj, (3 * N, 3), jnp.float32)    # [:, -1].reshape(-1,3) -> (N,3)
    cv_edge_indices = jnp.zeros((2, 10), jnp.int32)                     # unused
    cv_edge_features = jax.random.normal(k_cvf, (10, 1), jnp.float32)   # unused
    ov_edge_indices = jnp.zeros((2, 10), jnp.int32)                     # unused
    ov_edge_features = jax.random.normal(k_ovf, (10, 1), jnp.float32)   # unused
    num_graphs = 2

    params = init_params(k_params)

    out = mlp3_policy_forward(con_features, var_features, obj_features,
                              cv_edge_indices, cv_edge_features,
                              ov_edge_indices, ov_edge_features,
                              num_graphs, params)
    out = jax.block_until_ready(out)

    # Correctness check against a pure-JAX f32 reference (bf16 MXU inputs -> relaxed tol).
    feats_ref = jnp.concatenate(
        (con_features.reshape(-1, 3), obj_features[:, -1].reshape(-1, 3)), axis=-1)
    ref = _reference(feats_ref, params)
    assert out.shape == (N, 2), out.shape
    assert jnp.allclose(out, ref, atol=2e-2, rtol=2e-2), float(jnp.max(jnp.abs(out - ref)))

    print("KERNEL_OK")
</pallas_src>

<mosaic_0001>
module attributes {stable_mosaic.version = 11 : i64} {
  func.func @_mlp3_kernel(%arg0: i32, %arg1: memref<16x6xf32, #tpu.memory_space<vmem>>, %arg2: memref<6x64xbf16, #tpu.memory_space<vmem>>, %arg3: memref<1x64xf32, #tpu.memory_space<vmem>>, %arg4: memref<64x64xbf16, #tpu.memory_space<vmem>>, %arg5: memref<1x64xf32, #tpu.memory_space<vmem>>, %arg6: memref<64x64xbf16, #tpu.memory_space<vmem>>, %arg7: memref<1x64xf32, #tpu.memory_space<vmem>>, %arg8: memref<64x2xbf16, #tpu.memory_space<vmem>>, %arg9: memref<16x2xf32, #tpu.memory_space<vmem>>) attributes {dimension_semantics = [#tpu.dimension_semantics<parallel>], iteration_bounds = array<i64: 2>, scalar_prefetch = 0 : i64, scratch_operands = 0 : i64, tpu.core_type = #tpu.core_type<tc>, window_params = [{transform_indices = @transform_0, window_bounds = array<i64: 16, 6>}, {pipeline_mode = #tpu.pipeline_mode<synchronous>, transform_indices = @transform_1, window_bounds = array<i64: 6, 64>}, {pipeline_mode = #tpu.pipeline_mode<synchronous>, transform_indices = @transform_2, window_bounds = array<i64: 1, 64>}, {pipeline_mode = #tpu.pipeline_mode<synchronous>, transform_indices = @transform_3, window_bounds = array<i64: 64, 64>}, {pipeline_mode = #tpu.pipeline_mode<synchronous>, transform_indices = @transform_4, window_bounds = array<i64: 1, 64>}, {pipeline_mode = #tpu.pipeline_mode<synchronous>, transform_indices = @transform_5, window_bounds = array<i64: 64, 64>}, {pipeline_mode = #tpu.pipeline_mode<synchronous>, transform_indices = @transform_6, window_bounds = array<i64: 1, 64>}, {pipeline_mode = #tpu.pipeline_mode<synchronous>, transform_indices = @transform_7, window_bounds = array<i64: 64, 2>}, {transform_indices = @transform_8, window_bounds = array<i64: 16, 2>}]} {
    %c0 = arith.constant 0 : index
    %c0_0 = arith.constant 0 : index
    %0 = vector.load %arg1[%c0, %c0_0] : memref<16x6xf32, #tpu.memory_space<vmem>>, vector<16x6xf32>
    %cst = arith.constant dense<0.000000e+00> : vector<16xf32>
    %1 = vector.multi_reduction <add>, %0, %cst [1] : vector<16x6xf32> to vector<16xf32>
    %2 = vector.shape_cast %1 : vector<16xf32> to vector<16x1xf32>
    %cst_1 = arith.constant 6.000000e+00 : f32
    %3 = vector.broadcast %cst_1 : f32 to vector<16x1xf32>
    %4 = arith.divf %2, %3 : vector<16x1xf32>
    %5 = vector.broadcast %4 : vector<16x1xf32> to vector<16x6xf32>
    %6 = arith.subf %0, %5 : vector<16x6xf32>
    %7 = arith.mulf %6, %6 : vector<16x6xf32>
    %cst_2 = arith.constant dense<0.000000e+00> : vector<16xf32>
    %8 = vector.multi_reduction <add>, %7, %cst_2 [1] : vector<16x6xf32> to vector<16xf32>
    %9 = vector.shape_cast %8 : vector<16xf32> to vector<16x1xf32>
    %cst_3 = arith.constant 6.000000e+00 : f32
    %10 = vector.broadcast %cst_3 : f32 to vector<16x1xf32>
    %11 = arith.divf %9, %10 : vector<16x1xf32>
    %cst_4 = arith.constant 9.99999974E-6 : f32
    %12 = vector.broadcast %cst_4 : f32 to vector<16x1xf32>
    %13 = arith.addf %11, %12 : vector<16x1xf32>
    %14 = math.rsqrt %13 : vector<16x1xf32>
    %15 = vector.broadcast %14 : vector<16x1xf32> to vector<16x6xf32>
    %16 = arith.mulf %6, %15 : vector<16x6xf32>
    %17 = arith.truncf %16 : vector<16x6xf32> to vector<16x6xbf16>
    %c0_5 = arith.constant 0 : index
    %c0_6 = arith.constant 0 : index
    %18 = vector.load %arg2[%c0_5, %c0_6] : memref<6x64xbf16, #tpu.memory_space<vmem>>, vector<6x64xbf16>
    %cst_7 = arith.constant dense<0.000000e+00> : vector<16x64xf32>
    %19 = tpu.matmul %17, %18, %cst_7 {dimension_numbers = #tpu.dot_dimension_numbers<[1], [0], [0], [1], [0, 0, 1, 1], [], []>} : vector<16x6xbf16>, vector<6x64xbf16>, vector<16x64xf32> -> vector<16x64xf32>
    %c0_8 = arith.constant 0 : index
    %c0_9 = arith.constant 0 : index
    %20 = vector.load %arg3[%c0_8, %c0_9] : memref<1x64xf32, #tpu.memory_space<vmem>>, vector<1x64xf32>
    %21 = vector.broadcast %20 : vector<1x64xf32> to vector<16x64xf32>
    %22 = arith.addf %19, %21 : vector<16x64xf32>
    %cst_10 = arith.constant 0.000000e+00 : f32
    %23 = vector.broadcast %cst_10 : f32 to vector<16x64xf32>
    %24 = arith.maximumf %22, %23 : vector<16x64xf32>
    %25 = arith.truncf %24 : vector<16x64xf32> to vector<16x64xbf16>
    %c0_11 = arith.constant 0 : index
    %c0_12 = arith.constant 0 : index
    %26 = vector.load %arg4[%c0_11, %c0_12] : memref<64x64xbf16, #tpu.memory_space<vmem>>, vector<64x64xbf16>
    %cst_13 = arith.constant dense<0.000000e+00> : vector<16x64xf32>
    %27 = tpu.matmul %25, %26, %cst_13 {dimension_numbers = #tpu.dot_dimension_numbers<[1], [0], [0], [1], [0, 0, 1, 1], [], []>} : vector<16x64xbf16>, vector<64x64xbf16>, vector<16x64xf32> -> vector<16x64xf32>
    %c0_14 = arith.constant 0 : index
    %c0_15 = arith.constant 0 : index
    %28 = vector.load %arg5[%c0_14, %c0_15] : memref<1x64xf32, #tpu.memory_space<vmem>>, vector<1x64xf32>
    %29 = vector.broadcast %28 : vector<1x64xf32> to vector<16x64xf32>
    %30 = arith.addf %27, %29 : vector<16x64xf32>
    %cst_16 = arith.constant 0.000000e+00 : f32
    %31 = vector.broadcast %cst_16 : f32 to vector<16x64xf32>
    %32 = arith.maximumf %30, %31 : vector<16x64xf32>
    %33 = arith.truncf %32 : vector<16x64xf32> to vector<16x64xbf16>
    %c0_17 = arith.constant 0 : index
    %c0_18 = arith.constant 0 : index
    %34 = vector.load %arg6[%c0_17, %c0_18] : memref<64x64xbf16, #tpu.memory_space<vmem>>, vector<64x64xbf16>
    %cst_19 = arith.constant dense<0.000000e+00> : vector<16x64xf32>
    %35 = tpu.matmul %33, %34, %cst_19 {dimension_numbers = #tpu.dot_dimension_numbers<[1], [0], [0], [1], [0, 0, 1, 1], [], []>} : vector<16x64xbf16>, vector<64x64xbf16>, vector<16x64xf32> -> vector<16x64xf32>
    %c0_20 = arith.constant 0 : index
    %c0_21 = arith.constant 0 : index
    %36 = vector.load %arg7[%c0_20, %c0_21] : memref<1x64xf32, #tpu.memory_space<vmem>>, vector<1x64xf32>
    %37 = vector.broadcast %36 : vector<1x64xf32> to vector<16x64xf32>
    %38 = arith.addf %35, %37 : vector<16x64xf32>
    %cst_22 = arith.constant 0.000000e+00 : f32
    %39 = vector.broadcast %cst_22 : f32 to vector<16x64xf32>
    %40 = arith.maximumf %38, %39 : vector<16x64xf32>
    %41 = arith.truncf %40 : vector<16x64xf32> to vector<16x64xbf16>
    %c0_23 = arith.constant 0 : index
    %c0_24 = arith.constant 0 : index
    %42 = vector.load %arg8[%c0_23, %c0_24] : memref<64x2xbf16, #tpu.memory_space<vmem>>, vector<64x2xbf16>
    %cst_25 = arith.constant dense<0.000000e+00> : vector<16x2xf32>
    %43 = tpu.matmul %41, %42, %cst_25 {dimension_numbers = #tpu.dot_dimension_numbers<[1], [0], [0], [1], [0, 0, 1, 1], [], []>} : vector<16x64xbf16>, vector<64x2xbf16>, vector<16x2xf32> -> vector<16x2xf32>
    %c0_26 = arith.constant 0 : index
    %c0_27 = arith.constant 0 : index
    %44 = vector.load %arg9[%c0_26, %c0_27] : memref<16x2xf32, #tpu.memory_space<vmem>>, vector<16x2xf32>
    tpu.vector_store %arg9[%c0_26, %c0_27], %43 {strides = array<i32>} : memref<16x2xf32, #tpu.memory_space<vmem>>, vector<16x2xf32>,
    return
  }
  func.func @transform_0(%arg0: i32) -> (i32, i32) {
    %c0_i32 = arith.constant 0 : i32
    %c0_i32_0 = arith.constant 0 : i32
    return %arg0, %c0_i32 : i32, i32
  }
  func.func @transform_1(%arg0: i32) -> (i32, i32) {
    %c0_i32 = arith.constant 0 : i32
    %c0_i32_0 = arith.constant 0 : i32
    %c0_i32_1 = arith.constant 0 : i32
    return %c0_i32, %c0_i32_0 : i32, i32
  }
  func.func @transform_2(%arg0: i32) -> (i32, i32) {
    %c0_i32 = arith.constant 0 : i32
    %c0_i32_0 = arith.constant 0 : i32
    %c0_i32_1 = arith.constant 0 : i32
    return %c0_i32, %c0_i32_0 : i32, i32
  }
  func.func @transform_3(%arg0: i32) -> (i32, i32) {
    %c0_i32 = arith.constant 0 : i32
    %c0_i32_0 = arith.constant 0 : i32
    %c0_i32_1 = arith.constant 0 : i32
    return %c0_i32, %c0_i32_0 : i32, i32
  }
  func.func @transform_4(%arg0: i32) -> (i32, i32) {
    %c0_i32 = arith.constant 0 : i32
    %c0_i32_0 = arith.constant 0 : i32
    %c0_i32_1 = arith.constant 0 : i32
    return %c0_i32, %c0_i32_0 : i32, i32
  }
  func.func @transform_5(%arg0: i32) -> (i32, i32) {
    %c0_i32 = arith.constant 0 : i32
    %c0_i32_0 = arith.constant 0 : i32
    %c0_i32_1 = arith.constant 0 : i32
    return %c0_i32, %c0_i32_0 : i32, i32
  }
  func.func @transform_6(%arg0: i32) -> (i32, i32) {
    %c0_i32 = arith.constant 0 : i32
    %c0_i32_0 = arith.constant 0 : i32
    %c0_i32_1 = arith.constant 0 : i32
    return %c0_i32, %c0_i32_0 : i32, i32
  }
  func.func @transform_7(%arg0: i32) -> (i32, i32) {
    %c0_i32 = arith.constant 0 : i32
    %c0_i32_0 = arith.constant 0 : i32
    %c0_i32_1 = arith.constant 0 : i32
    return %c0_i32, %c0_i32_0 : i32, i32
  }
  func.func @transform_8(%arg0: i32) -> (i32, i32) {
    %c0_i32 = arith.constant 0 : i32
    %c0_i32_0 = arith.constant 0 : i32
    return %arg0, %c0_i32 : i32, i32
  }
}

</mosaic_0001>

<bundles_post_ra>
// kernel: mlp3_pallas.1
= control target key start
LH: loop header
LB: loop body
LE: loop exit
PB: predicated region body
PF: predicated region fallthrough
CT: control target
= control target key end

     0   :  { %s1235_s27 = smov 0   ;;  %s1237_s28 = smov 0   ;;  %s1395_s0 = inlined_call_operand.vmem [shape: f32[24,6], index: 0, kind: input, shape index: {}]   ;;  %s1396_s1 = inlined_call_operand.vmem [shape: bf16[6,64], index: 1, kind: input, shape index: {}]   ;;  %s1397_s2 = inlined_call_operand.vmem [shape: f32[1,64], index: 2, kind: input, shape index: {}]   ;;  %s1398_s3 = inlined_call_operand.vmem [shape: bf16[64,64], index: 3, kind: input, shape index: {}]   ;;  %s1399_s4 = inlined_call_operand.vmem [shape: f32[1,64], index: 4, kind: input, shape index: {}]   ;;  %s1400_s5 = inlined_call_operand.vmem [shape: bf16[64,64], index: 5, kind: input, shape index: {}]   ;;  %s1401_s6 = inlined_call_operand.vmem [shape: f32[1,64], index: 6, kind: input, shape index: {}]   ;;  %s1402_s7 = inlined_call_operand.vmem [shape: bf16[64,2], index: 7, kind: input, shape index: {}]   ;;  %s1403_s8 = inlined_call_operand.vmem [shape: f32[24,2], index: 8, kind: output, shape index: {}]  }
   0x1   :  { %s1239_s29 = smov 0  }
   0x2 LB: > { %s1248_s30 = sadd.s32 4294967295, %s1154_s29   ;;  %s1250_s9 = sadd.s32 1, %s1154_s29   ;;  %s1154_s29 = sphi %s1239_s29, %s1407_s29   ;;  %s1150_s28 = sphi %s1237_s28, %s1406_s28   ;;  %s1146_s27 = sphi %s1235_s27, %s1405_s27  }
   0x3   : > { %s195_s10 = ssub.s32 %s1154_s29, %s1250_s9  ;;  %s198_s11 = sadd.s32 1, %s1150_s28 }
   0x4   : > { %p196_p0 = scmp.eq.s32.totalorder %s195_s10, 0  ;;  %p208_p1 = scmp.ne.s32.totalorder %s1150_s28, %s1146_s27 }
   0x5   : > { %p209_p2 = scmp.eq.s32.totalorder %s1248_s30, 1  ;;  %p892_p3 = scmp.ge.s32.totalorder %s1154_s29, 1 }
   0x6   : > { %s1258_s12 = scalar_select %p196_p0, %s1150_s28, %s198_s11  }
   0x7   : > { %p1260_p4 = por %p209_p2, %p208_p1  ;;  %p271_p5 = scmp.lt.s32.totalorder %s1154_s29, 3 }
   0x9   : > { %p272_p6 = pnand %p892_p3, %p271_p5 }
   0xa   : > { %s1265_s14 = sshll.u32 (!%p272_p6), %s1248_s30, 1  ;;  %vm330_vm0 = vcmask (!%p272_p6), 48128   ;;  %v359_v14 = vld [vmem:[%s1396_s1] sm:$0x7] (!%p272_p6)  ;;  %vm370_vm1 = vcmask (!%p272_p6), 1042432   ;;  %v1188_v15 = vmov (!%p272_p6), 0.0  }
   0xb   : > { %275 = sbr.rel (%p272_p6) target bundleno = 1262 (0x4ee), region = 52  ;;  %p313_p7 = scmp.lt.s32.totalorder (!%p272_p6), %s1265_s14, 2  ;;  %952 = vmatprep.subr.bf16.mxu0 (!%p272_p6), %v1188_v15  ;;  %v372_v16 = vsel (!%p272_p6), %vm370_vm1, %v359_v14, 0  ;;  %vm1189_vm2 = vmmov (!%p272_p6), 0   ;;  %958 = vmatprep.subr.bf16.mxu1 (!%p272_p6), %v1188_v15  ;;  %v1084_v17 = vld [vmem:[%s1398_s3] sm:$0xff] (!%p272_p6)   ;;  %v1085_v18 = vld [vmem:[%s1398_s3 + $0x8] sm:$0xff] (!%p272_p6)  }
   0xc   : > { %954 = vmatprep.mubr.msk.bf16.mxu0 (!%p272_p6), %vm1189_vm2, %v1188_v15  ;;  %953 = vmatpush3.bf16.msra.mxu0 (!%p272_p6), %v372_v16  ;;  %v1086_v30 = vld [vmem:[%s1398_s3 + $0x10] sm:$0xff] (!%p272_p6)   ;;  %v1087_v31 = vld [vmem:[%s1398_s3 + $0x18] sm:$0xff] (!%p272_p6)   ;;  %v1088_v32 = vld [vmem:[%s1400_s5] sm:$0xff] (!%p272_p6)   ;;  %vm457_vm3 = vcmask (!%p272_p6), 523264   ;;  %s305_s22 = sand.u32 (!%p272_p6), 1, %s1146_s27   ;;  %vm667_vm4 = vcmask (!%p272_p6), 15360  }
   0xd   : > { %966 = vmatprep.mubr.msk.bf16.mxu1 (!%p272_p6), %vm1189_vm2, %v1188_v15  ;;  %970 = vmatprep.subr.bf16.mxu0 (!%p272_p6), %v1188_v15  ;;  %v1089_v33 = vld [vmem:[%s1400_s5 + $0x8] sm:$0xff] (!%p272_p6)   ;;  %v896_v34 = vld [vmem:[%s1397_s2] ss:$0 sm:$0xff] (!%p272_p6)  ;;  %v1090_v44 = vld [vmem:[%s1400_s5 + $0x10] sm:$0xff] (!%p272_p6)   ;;  %s893_s23 = sshll.u32 (!%p272_p6), %s305_s22, 4 }
   0xe   : > { %959 = vmatpush3.bf16.msra.mxu1 (!%p272_p6), %v1084_v17  ;;  %v1091_v45 = vld [vmem:[%s1400_s5 + $0x18] sm:$0xff] (!%p272_p6)   ;;  %v1092_v46 = vld [vmem:[%s1402_s7] sm:$0xff] (!%p272_p6)   ;;  %v1093_v47 = vld [vmem:[%s1402_s7 + $0x8] sm:$0xff] (!%p272_p6)   ;;  %s1350_s24 = scalar_lea.vmem (!%p272_p6), [#allocation2], %s893_s23  }
   0xf   : > { %960 = vmatprep.subr.bf16.mxu1 (!%p272_p6), %v1188_v15  ;;  %v898_v48 = vld [vmem:[%s1399_s4] ss:$0 sm:$0xff] (!%p272_p6)  ;;  %v1094_v58 = vld [vmem:[%s1402_s7 + $0x10] sm:$0xff] (!%p272_p6)   ;;  %v1095_v59 = vld [vmem:[%s1402_s7 + $0x18] sm:$0xff] (!%p272_p6)  }
  0x10   : > { %v904_v60 = vld [vmem:[%s1401_s6] ss:$0 sm:$0xff] (!%p272_p6) }
  0x12   : > { %s314_s15 = scalar_select %p313_p7, %s1265_s14, 2  ;;  %961 = vmatpush3.bf16.msra.mxu1 %v1085_v18 }
  0x13   : > { %962 = vmatprep.subr.bf16.mxu1 %v1188_v15  ;;  %s678_s25 = ssub.s32 (%p1260_p4), 3, %s1265_s14  ;;  %s932_s26 = sshll.u32 (%p1260_p4), %s1248_s30, 4 }
  0x14   : > { %s895_s16 = sshll.u32 %s314_s15, 3  ;;  %p679_p8 = scmp.lt.s32.totalorder (%p1260_p4), %s678_s25, 2 }
  0x15   : > { %s316_s19 = scalar_lea.vmem %s1395_s0, %s895_s16  ;;  %s1361_s10 = scalar_lea.vmem (%p1260_p4), %s1403_s8, %s932_s26  }
  0x16   : > { %v328_v0 = vld [vmem:[%s316_s19] sm:$0xff]  ;;  %v329_v1 = vld [vmem:[%s316_s19 + $0x8] sm:$0xff]  ;;  %963 = vmatpush3.bf16.msra.mxu1 %v1086_v30 }
  0x17   : > { %v331_v2 = vsel %vm330_vm0, %v328_v0, 0.0  ;;  %v334_v3 = vsel %vm330_vm0, %v329_v1, 0.0  ;;  %964 = vmatprep.subr.bf16.mxu1 %v1188_v15 }
  0x18   : > { %332 = vadd.xlane.f32.xlu0 %v331_v2 }
  0x1a   : > { %965 = vmatpush3.bf16.msra.mxu1 %v1087_v31 }
  0x1b   : > { %982 = vmatprep.subr.bf16.mxu1 %v1188_v15 }
  0x1c   : > { %335 = vadd.xlane.f32.xlu0 %v334_v3 }
  0xa5   : > { %v333_v4 = vpop.xlane.xlu0 %332 }
  0xa6   : > { %v338_v5 = vmul.f32 0.16666667, %v333_v4 }
  0xa8   : > { %v340_v6 = vsub.f32 %v328_v0, %v338_v5 }
  0xa9   : > { %v336_v7 = vpop.xlane.xlu0 %335 }
  0xaa   : > { %v339_v8 = vmul.f32 0.16666667, %v336_v7  ;;  %v342_v9 = vmul.f32 %v340_v6, %v340_v6 }
  0xac   : > { %v341_v10 = vsub.f32 %v329_v1, %v339_v8  ;;  %v344_v11 = vsel %vm330_vm0, %v342_v9, 0.0 }
  0xad   : > { %345 = vadd.xlane.f32.xlu1 %v344_v11 }
  0xae   : > { %v343_v12 = vmul.f32 %v341_v10, %v341_v10 }
  0xb0   : > { %v347_v13 = vsel %vm330_vm0, %v343_v12, 0.0 }
  0xb1   : > { %348 = vadd.xlane.f32.xlu1 %v347_v13 }
 0x13a   : > { %v346_v19 = vpop.xlane.xlu1 %345 }
 0x13b   : > { %v350_v20 = vmul.f32 0.16666667, %v346_v19 }
 0x13d   : > { %v352_v21 = vadd.f32 1e-05, %v350_v20 }
 0x13e   : > { %v349_v22 = vpop.xlane.xlu1 %348 }
 0x13f   : > { %v351_v23 = vmul.f32 0.16666667, %v349_v22  ;;  %1096 = vrsqrt.f32 %v352_v21 }
 0x141   : > { %v353_v24 = vadd.f32 1e-05, %v351_v23 }
 0x143   : > { %1098 = vrsqrt.f32 %v353_v24 }
 0x149   : > { %v1097_v25 = vpop.eup %1096 }
 0x14a   : > { %v356_v27 = vmul.f32 %v1097_v25, %v340_v6 }
 0x14d   : > { %v1099_v26 = vpop.eup %1098 }
 0x14e   : > { %v357_v28 = vmul.f32 %v1099_v26, %v341_v10 }
 0x150   : > { %v358_v29 = vpack.c.bf16 %v357_v28, %v356_v27 }
 0x152   : > { %955 = vmatmul.mubr.msk.bf16.vlgmr.msra.gmra.mrb[0].mxu0 %vm330_vm0, %v358_v29 }
 0x153   : > { %978 = vmatprep.mubr.msk.bf16.mxu0 %vm1189_vm2, %v1188_v15  ;;  %971 = vmatpush3.bf16.msra.mxu0 %v1088_v32 }
 0x154   : > { %972 = vmatprep.subr.bf16.mxu0 %v1188_v15 }
 0x157   : > { %973 = vmatpush3.bf16.msra.mxu0 %v1089_v33 }
 0x158   : > { %974 = vmatprep.subr.bf16.mxu0 %v1188_v15 }
 0x15b   : > { %975 = vmatpush3.bf16.msra.mxu0 %v1090_v44 }
 0x15c   : > { %976 = vmatprep.subr.bf16.mxu0 %v1188_v15 }
 0x15f   : > { %977 = vmatpush3.bf16.msra.mxu0 %v1091_v45 }
 0x225   : > { %v408_v35 = vpop.f32.mrb[0].mxu0 }
 0x226   : > { %v409_v36 = vadd.f32 %v896_v34, %v408_v35  ;;  %v956_v37 = vpop.f32.mrb[1].mxu0 }
 0x227   : > { %v411_v38 = vpop.f32.mrb[2].mxu0 }
 0x228   : > { %v412_v39 = vadd.f32 %v896_v34, %v411_v38  ;;  %v957_v40 = vpop.f32.mrb[3].mxu0  ;;  %v415_v41 = vmax.f32 %v409_v36, 0.0 }
 0x22a   : > { %v416_v42 = vmax.f32 %v412_v39, 0.0 }
 0x22c   : > { %v417_v43 = vpack.c.bf16 %v416_v42, %v415_v41 }
 0x22e   : > { %967 = vmatmul.mubr.msk.bf16.vlgmr.msra.gmra.mrb[0].mxu1 %vm457_vm3, %v417_v43 }
 0x22f   : > { %990 = vmatprep.mubr.msk.bf16.mxu1 %vm1189_vm2, %v1188_v15  ;;  %983 = vmatpush3.bf16.msra.mxu1 %v1092_v46 }
 0x230   : > { %984 = vmatprep.subr.bf16.mxu1 %v1188_v15 }
 0x233   : > { %985 = vmatpush3.bf16.msra.mxu1 %v1093_v47 }
 0x234   : > { %986 = vmatprep.subr.bf16.mxu1 %v1188_v15 }
 0x237   : > { %987 = vmatpush3.bf16.msra.mxu1 %v1094_v58 }
 0x238   : > { %988 = vmatprep.subr.bf16.mxu1 %v1188_v15 }
 0x23b   : > { %989 = vmatpush3.bf16.msra.mxu1 %v1095_v59 }
 0x301   : > { %v495_v49 = vpop.f32.mrb[0].mxu1 }
 0x302   : > { %v496_v50 = vadd.f32 %v898_v48, %v495_v49  ;;  %v968_v51 = vpop.f32.mrb[1].mxu1 }
 0x303   : > { %v498_v52 = vpop.f32.mrb[2].mxu1 }
 0x304   : > { %v499_v53 = vadd.f32 %v898_v48, %v498_v52  ;;  %v969_v54 = vpop.f32.mrb[3].mxu1  ;;  %v502_v55 = vmax.f32 %v496_v50, 0.0 }
 0x306   : > { %v503_v56 = vmax.f32 %v499_v53, 0.0 }
 0x308   : > { %v504_v57 = vpack.c.bf16 %v503_v56, %v502_v55 }
 0x30a   : > { %979 = vmatmul.mubr.msk.bf16.vlgmr.msra.gmra.mrb[4].mxu0 %vm457_vm3, %v504_v57 }
 0x3dd   : > { %v581_v61 = vpop.f32.mrb[4].mxu0 }
 0x3de   : > { %v582_v62 = vadd.f32 %v904_v60, %v581_v61  ;;  %v980_v63 = vpop.f32.mrb[5].mxu0 }
 0x3df   : > { %v584_v0 = vpop.f32.mrb[6].mxu0 }
 0x3e0   : > { %v585_v1 = vadd.f32 %v904_v60, %v584_v0  ;;  %v981_v2 = vpop.f32.mrb[7].mxu0  ;;  %v588_v3 = vmax.f32 %v582_v62, 0.0 }
 0x3e2   : > { %v589_v4 = vmax.f32 %v585_v1, 0.0 }
 0x3e4   : > { %v590_v5 = vpack.c.bf16 %v589_v4, %v588_v3 }
 0x3e6   : > { %991 = vmatmul.mubr.msk.bf16.vlgmr.msra.gmra.mrb[4].mxu1 %vm457_vm3, %v590_v5 }
 0x4b6   : > { %676 = sbr.rel (!%p1260_p4) target bundleno = 1262 (0x4ee), region = 56 }
 0x4b9   : > { %v660_v6 = vpop.f32.mrb[4].mxu1 }
 0x4ba   : > { %668 = vst.msk [vmem:[%s1350_s24] sm:$0xff] %vm667_vm4, %v660_v6  ;;  %v992_v7 = vpop.f32.mrb[5].mxu1 }
 0x4bb   : > { %v663_v8 = vpop.f32.mrb[6].mxu1 }
 0x4bc   : > { %669 = vst.msk [vmem:[%s1350_s24 + $0x8] sm:$0xff] %vm667_vm4, %v663_v8  ;;  %v993_v9 = vpop.f32.mrb[7].mxu1 }
 0x4bd   : > { %s1409_s25 = smov (!%p679_p8, %s678_s25), 2 }
 0x4be   : > { %s917_s11 = sshll.u32 %s1409_s25, 7 }
 0x4bf   : > { %p920_p9 = scmp.eq.s32.totalorder %s917_s11, 0 }
 0x4c0   : > { %s1367_s15 = sshrl.u32 (!%p920_p9), %s1409_s25, 1 }
 0x4c1   : > { %687 = sbr.rel (%p920_p9) target bundleno = 1262 (0x4ee), region = 60  ;;  %p921_p10 = scmp.le.s32.totalorder (!%p920_p9), %s1367_s15, 0 }
 0x4c8   : > { %845 = sbr.rel (%p921_p10) target bundleno = 1241 (0x4d9), region = 136  ;;  %s1156_s30 = smov (!%p921_p10), %s1361_s10  }
 0x4c9   : > { %s1160_s13 = smov (!%p921_p10), %s1350_s24   ;;  %s1164_s14 = smov (!%p921_p10), 0  }
 0x4ca   : > { %s1168_s16 = smov (!%p921_p10), 0  }
 0x4cf LB: >> { %v751_v10 = vld [vmem:[%s1162_s13] sm:$0xff]  ;;  %v753_v11 = vld [vmem:[%s1162_s13 + $0x8] sm:$0xff]  ;;  %s755_s17 = sadd.s32 1, %s1166_s14  ;;  %s745_s16 = sadd.s32 1, %s1170_s16   ;;  %s1170_s16 = sphi %s1168_s16, %s745_s16   ;;  %s1166_s14 = sphi %s1164_s14, %s1165_s14   ;;  %s1162_s13 = sphi %s1160_s13, %s760_s13   ;;  %s1158_s30 = sphi %s1156_s30, %s761_s30  }
 0x4d0   : >> { %752 = vst [vmem:[%s1158_s30] sm:$0xff] %v751_v10  ;;  %754 = vst [vmem:[%s1158_s30 + $0x8] sm:$0xff] %v753_v11  ;;  %p756_p11 = scmp.ge.s32.totalorder %s755_s17, %s1367_s15  ;;  %p744_p12 = scmp.ge.s32.totalorder %s745_s16, %s1367_s15 }
 0x4d2   : >> { %s1411_s17 = smov (%p756_p11, %s755_s17), 0  ;;  %747 = sbr.rel (!%p744_p12) target bundleno = 1231 (0x4cf), region = 142 }
 0x4d3   : >> { %s922_s18 = sshll.u32 %s1411_s17, 4  ;;  %s1165_s14 = smov %s1411_s17  }
 0x4d4   : >> { %s760_s13 = scalar_lea.vmem %s1350_s24, %s922_s18 [#allocation2]   ;;  %s761_s30 = scalar_lea.vmem %s1361_s10, %s922_s18  }
 0x4d9 PF: > { %s1377_s19 = sand.u32 1, %s1409_s25   ;;  %s933_s20 = sshll.u32 %s1367_s15, 4 }
 0x4da   : > { %s766_s21 = scalar_lea.vmem %s1350_s24, %s933_s20 [#allocation2]   ;;  %s768_s22 = scalar_lea.vmem %s1361_s10, %s933_s20  }
 0x4db   : > { %p927_p13 = scmp.le.s32.totalorder %s1377_s19, 0 }
 0x4dc   : > { %s1172_s23 = smov (!%p927_p13), %s768_s22   ;;  %s1176_s26 = smov (!%p927_p13), %s766_s21  }
 0x4dd   : > { %859 = sbr.rel (%p927_p13) target bundleno = 1262 (0x4ee), region = 147  ;;  %s1180_s27 = smov (!%p927_p13), 0  }
 0x4de   : > { %s1184_s29 = smov (!%p927_p13), 0  }
 0x4e4 LB: >> { %v778_v12 = vld [vmem:[%s1178_s26] sm:$0xff]  ;;  %s780_s25 = sadd.s32 1, %s1182_s27  ;;  %s772_s29 = sadd.s32 1, %s1186_s29   ;;  %s1186_s29 = sphi %s1184_s29, %s772_s29   ;;  %s1182_s27 = sphi %s1180_s27, %s1181_s27   ;;  %s1178_s26 = sphi %s1176_s26, %s785_s26   ;;  %s1174_s23 = sphi %s1172_s23, %s786_s23  }
 0x4e5   : >> { %779 = vst [vmem:[%s1174_s23] sm:$0xff] %v778_v12  ;;  %p781_p0 = scmp.ge.s32.totalorder %s780_s25, %s1377_s19  ;;  %p771_p1 = scmp.ge.s32.totalorder %s772_s29, %s1377_s19 }
 0x4e7   : >> { %s1413_s25 = smov (%p781_p0, %s780_s25), 0  ;;  %774 = sbr.rel (!%p771_p1) target bundleno = 1252 (0x4e4), region = 153 }
 0x4e8   : >> { %s928_s24 = sshll.u32 %s1413_s25, 3  ;;  %s1181_s27 = smov %s1413_s25  }
 0x4e9   : >> { %s785_s26 = scalar_lea.vmem %s766_s21, %s928_s24 [#allocation2]   ;;  %s786_s23 = scalar_lea.vmem %s768_s22, %s928_s24  }
 0x4ee PF: > { %p15_p2 = scmp.ge.s32.totalorder %s1250_s9, 4   ;;  %s1405_s27 = smov %s1150_s28 }
 0x4ef   : > { %s1406_s28 = smov %s1258_s12  ;;  %s1407_s29 = smov %s1250_s9 }
 0x4f0   :  { %17 = sbr.rel (!%p15_p2) target bundleno = 2 (0x2), region = 164 }

</bundles_post_ra>
